<compile_context>
chip_gen: v5e
topology: v5e:2x2
jax: 0.10.0
libtpu: 0.0.40
codegen_flags: <defaults>
</compile_context>

<pallas_src>
import functools
import math

import jax
import jax.numpy as jnp
from jax.experimental import pallas as pl
from jax.experimental.pallas import tpu as pltpu


# ----------------------------- in-kernel helpers -----------------------------

def _layernorm(x, g, b, eps=1e-12):
    mu = jnp.mean(x, axis=-1, keepdims=True)
    var = jnp.mean((x - mu) ** 2, axis=-1, keepdims=True)
    return (x - mu) * jax.lax.rsqrt(var + eps) * g + b


def _gelu(x):
    # TODO(synk): HF DistilBERT uses exact erf-GELU; tanh approximation used here.
    c = 0.7978845608028654  # sqrt(2/pi)
    return 0.5 * x * (1.0 + jnp.tanh(c * (x + 0.044715 * x * x * x)))


# ---------------------- generation-aware VMEM limit ---------------------------

_VMEM_LIMIT = None


def _vmem_limit_bytes():
    """48 MiB on 64-MiB-VMEM parts (v7x), 64 MiB on 128-MiB parts (v5e/v6e)."""
    global _VMEM_LIMIT
    if _VMEM_LIMIT is not None:
        return _VMEM_LIMIT
    try:
        cap = pltpu.get_tpu_info().vmem_capacity_bytes
    except Exception:
        cap = 128 * 1024 * 1024
    _VMEM_LIMIT = 48 * 1024 * 1024 if cap <= 64 * 1024 * 1024 else 64 * 1024 * 1024
    return _VMEM_LIMIT


# ------------- single-buffering probe for grid-invariant weights -------------

_SINGLE_BUFFER_OK = None


def _single_buffering_supported():
    """Check once whether pipeline_mode=pl.Buffered(1) is usable on this JAX/TPU."""
    global _SINGLE_BUFFER_OK
    if _SINGLE_BUFFER_OK is not None:
        return _SINGLE_BUFFER_OK

    def _k(x_ref, o_ref):
        o_ref[...] = x_ref[...] + 1.0

    try:
        spec = pl.BlockSpec((8, 128), lambda i: (0, 0),
                            pipeline_mode=pl.Buffered(1))
        out = pl.pallas_call(
            _k,
            out_shape=jax.ShapeDtypeStruct((8, 128), jnp.float32),
            grid=(2,),
            in_specs=[spec],
            out_specs=pl.BlockSpec((8, 128), lambda i: (0, 0)),
        )(jnp.zeros((8, 128), jnp.float32))
        jax.block_until_ready(out)
        _SINGLE_BUFFER_OK = True
    except Exception:
        _SINGLE_BUFFER_OK = False
    return _SINGLE_BUFFER_OK


def _invariant_spec(block_shape, index_map):
    """BlockSpec for grid-invariant operands: single VMEM buffer when supported."""
    if _single_buffering_supported():
        return pl.BlockSpec(block_shape, index_map, pipeline_mode=pl.Buffered(1))
    return pl.BlockSpec(block_shape, index_map)


# ----------------------------- Pallas kernels --------------------------------

def emb_ln_kernel(x_ref, g_ref, b_ref, o_ref):
    o_ref[...] = _layernorm(x_ref[...], g_ref[...], b_ref[...]).astype(o_ref.dtype)


def attn_kernel(bias_ref, x_ref, wqkv_ref, bqkv_ref, wo_ref, bo_ref,
                ln1g_ref, ln1b_ref, out_ref, *, n_heads, head_dim):
    """Self-attention + output projection + residual + LN1 for one batch row."""
    dh = head_dim
    D = n_heads * dh

    x = x_ref[0]                                     # (S, D) bf16
    x_f32 = x.astype(jnp.float32)
    bias = bias_ref[0]                               # (1, S) f32, precomputed

    # Fused full-width QKV projection (bf16 MXU inputs, f32 accumulation).
    # 1/sqrt(dh) is folded into the Q columns of wqkv/bqkv.
    qkv = (jnp.dot(x, wqkv_ref[...], preferred_element_type=jnp.float32)
           + bqkv_ref[...])                          # (S, 3D) f32

    # Per-head attention (static loop, static lane slices); only one head's
    # (S, S) score matrix is live at a time.
    ctx_parts = []
    for h in range(n_heads):
        q = qkv[:, h * dh:(h + 1) * dh].astype(jnp.bfloat16)
        k = qkv[:, D + h * dh:D + (h + 1) * dh].astype(jnp.bfloat16)
        v = qkv[:, 2 * D + h * dh:2 * D + (h + 1) * dh].astype(jnp.bfloat16)
        s = jax.lax.dot_general(q, k, (((1,), (1,)), ((), ())),
                                preferred_element_type=jnp.float32)   # (S, S)
        s = s + bias
        m = jnp.max(s, axis=-1, keepdims=True)
        e = jnp.exp(s - m)
        p = e * pl.reciprocal(jnp.sum(e, axis=-1, keepdims=True), approx=True)
        ctx_parts.append(jnp.dot(p.astype(jnp.bfloat16), v,
                                 preferred_element_type=jnp.float32))  # (S, dh)

    ctx = jnp.concatenate(ctx_parts, axis=-1).astype(jnp.bfloat16)     # (S, D)

    # Single full-D output projection (contraction K = D, best MXU shape).
    attn = (jnp.dot(ctx, wo_ref[...], preferred_element_type=jnp.float32)
            + bo_ref[...])
    h1 = _layernorm(attn + x_f32, ln1g_ref[...], ln1b_ref[...])
    out_ref[0] = h1.astype(out_ref.dtype)


def ffn_kernel(x_ref, w1_ref, b1_ref, w2_ref, b2_ref, ln2g_ref, ln2b_ref,
               out_ref, acc_ref):
    """GELU FFN tiled over the FFN dim + residual + LN2; accumulates in scratch."""
    f = pl.program_id(1)

    @pl.when(f == 0)
    def _():
        acc_ref[...] = jnp.zeros_like(acc_ref)

    x = x_ref[0]                                                      # (S, D) bf16
    h = (jnp.dot(x, w1_ref[...], preferred_element_type=jnp.float32)
         + b1_ref[...])                                               # (S, tile_f)
    h = _gelu(h)
    acc_ref[...] += jnp.dot(h.astype(jnp.bfloat16), w2_ref[...],
                            preferred_element_type=jnp.float32)       # (S, D)

    @pl.when(f == pl.num_programs(1) - 1)
    def _():
        y = acc_ref[...] + b2_ref[...] + x.astype(jnp.float32)
        out_ref[0] = _layernorm(y, ln2g_ref[...], ln2b_ref[...]).astype(out_ref.dtype)


# ----------------------------- wrappers ---------------------------------------

def _row_tile(n_rows):
    for t in (1024, 512, 256, 128, 64, 32, 16, 8):
        if t <= n_rows and n_rows % t == 0:
            return t
    return n_rows


def _ffn_tile(ffn_dim):
    if ffn_dim <= 1024:
        return ffn_dim
    for t in (1024, 768, 512, 384, 256, 128):
        if ffn_dim % t == 0:
            return t
    return ffn_dim


def embedding_layernorm_pallas(x_f32, g, b):
    """LayerNorm over flattened (B*S, D) rows; f32 in, bf16 out."""
    BS, D = x_f32.shape
    rt = _row_tile(BS)
    return pl.pallas_call(
        emb_ln_kernel,
        out_shape=jax.ShapeDtypeStruct((BS, D), jnp.bfloat16),
        grid=(BS // rt,),
        in_specs=[pl.BlockSpec((rt, D), lambda i: (i, 0)),
                  _invariant_spec((1, D), lambda i: (0, 0)),
                  _invariant_spec((1, D), lambda i: (0, 0))],
        out_specs=pl.BlockSpec((rt, D), lambda i: (i, 0)),
        compiler_params=pltpu.CompilerParams(
            dimension_semantics=("parallel",),
            vmem_limit_bytes=32 * 1024 * 1024),
    )(x_f32, g, b)


def attention_block_pallas(x_bf16, mask_bias, p, n_heads):
    B, S, D = x_bf16.shape
    return pl.pallas_call(
        functools.partial(attn_kernel, n_heads=n_heads, head_dim=D // n_heads),
        out_shape=jax.ShapeDtypeStruct((B, S, D), jnp.bfloat16),
        grid=(B,),
        in_specs=[
            pl.BlockSpec((1, 1, S), lambda b: (b, 0, 0)),     # additive mask bias
            pl.BlockSpec((1, S, D), lambda b: (b, 0, 0)),     # hidden states (bf16)
            _invariant_spec((D, 3 * D), lambda b: (0, 0)),    # fused QKV weight
            _invariant_spec((1, 3 * D), lambda b: (0, 0)),    # fused QKV bias
            _invariant_spec((D, D), lambda b: (0, 0)),        # output projection
            _invariant_spec((1, D), lambda b: (0, 0)),        # bo
            _invariant_spec((1, D), lambda b: (0, 0)),        # ln1_g
            _invariant_spec((1, D), lambda b: (0, 0)),        # ln1_b
        ],
        out_specs=pl.BlockSpec((1, S, D), lambda b: (b, 0, 0)),
        compiler_params=pltpu.CompilerParams(
            dimension_semantics=("parallel",),
            vmem_limit_bytes=_vmem_limit_bytes()),
    )(mask_bias, x_bf16, p['wqkv'], p['bqkv'], p['wo'], p['bo'],
      p['ln1_g'], p['ln1_b'])


def ffn_block_pallas(x_bf16, p):
    B, S, D = x_bf16.shape
    F = p['w1'].shape[1]
    tf = _ffn_tile(F)
    nf = F // tf
    return pl.pallas_call(
        ffn_kernel,
        out_shape=jax.ShapeDtypeStruct((B, S, D), jnp.bfloat16),
        grid=(B, nf),
        in_specs=[
            pl.BlockSpec((1, S, D), lambda b, f: (b, 0, 0)),      # post-LN1 hidden
            pl.BlockSpec((D, tf), lambda b, f: (0, f)),           # w1 tile
            pl.BlockSpec((1, tf), lambda b, f: (0, f)),           # b1 tile
            pl.BlockSpec((tf, D), lambda b, f: (f, 0)),           # w2 tile
            _invariant_spec((1, D), lambda b, f: (0, 0)),         # b2
            _invariant_spec((1, D), lambda b, f: (0, 0)),         # ln2_g
            _invariant_spec((1, D), lambda b, f: (0, 0)),         # ln2_b
        ],
        out_specs=pl.BlockSpec((1, S, D), lambda b, f: (b, 0, 0)),
        scratch_shapes=[pltpu.VMEM((S, D), jnp.float32)],
        compiler_params=pltpu.CompilerParams(
            dimension_semantics=("parallel", "arbitrary"),
            vmem_limit_bytes=_vmem_limit_bytes()),
    )(x_bf16, p['w1'], p['b1'], p['w2'], p['b2'], p['ln2_g'], p['ln2_b'])


def text_encoder_forward(input_ids, attention_mask, kparams, *, n_heads):
    """Equivalent of TextEncoder.forward: DistilBERT last_hidden_state[:, 0, :]."""
    B, S = input_ids.shape
    D = kparams['word_emb'].shape[1]

    # Embeddings (gather is plain-JAX glue): word + position, then LayerNorm.
    word = jnp.take(kparams['word_emb'], input_ids, axis=0)          # (B, S, D)
    pos = kparams['pos_emb'][:S][None, :, :]                         # (1, S, D)
    x = (word + pos).astype(jnp.float32).reshape(B * S, D)
    x = embedding_layernorm_pallas(x, kparams['emb_ln_g'], kparams['emb_ln_b'])
    x = x.reshape(B, S, D)                                           # bf16

    # Additive mask bias precomputed once: 0 keep / -1e9 masked (finite).
    mask_bias = ((attention_mask.astype(jnp.float32) - 1.0) * 1e9).reshape(B, 1, S)

    for layer in kparams['layers']:
        x = attention_block_pallas(x, mask_bias, layer, n_heads)
        x = ffn_block_pallas(x, layer)

    # target_token_idx = 0 (CLS token)
    return x[:, 0, :].astype(jnp.float32)


# ----------------------------- parameters -------------------------------------

def init_params(key, vocab, max_pos, dim, n_layers, ffn_dim):
    n_rand = 2 + n_layers * 6
    keys = iter(jax.random.split(key, n_rand))

    def w(shape):
        return jax.random.normal(next(keys), shape, jnp.float32) * 0.02

    params = {
        'word_emb': w((vocab, dim)),
        'pos_emb': w((max_pos, dim)),
        'emb_ln_g': jnp.ones((1, dim), jnp.float32),
        'emb_ln_b': jnp.zeros((1, dim), jnp.float32),
        'layers': [],
    }
    for _ in range(n_layers):
        params['layers'].append({
            'wq': w((dim, dim)), 'bq': jnp.zeros((1, dim), jnp.float32),
            'wk': w((dim, dim)), 'bk': jnp.zeros((1, dim), jnp.float32),
            'wv': w((dim, dim)), 'bv': jnp.zeros((1, dim), jnp.float32),
            'wo': w((dim, dim)), 'bo': jnp.zeros((1, dim), jnp.float32),
            'ln1_g': jnp.ones((1, dim), jnp.float32),
            'ln1_b': jnp.zeros((1, dim), jnp.float32),
            'w1': w((dim, ffn_dim)), 'b1': jnp.zeros((1, ffn_dim), jnp.float32),
            'w2': w((ffn_dim, dim)), 'b2': jnp.zeros((1, dim), jnp.float32),
            'ln2_g': jnp.ones((1, dim), jnp.float32),
            'ln2_b': jnp.zeros((1, dim), jnp.float32),
        })
    return params


def prepare_encoder_params(params, n_heads):
    """One-time transform into the kernel-ready layout: bf16 weights, fused
    QKV weight/bias with the 1/sqrt(dh) attention scale folded into Q."""
    D = params['word_emb'].shape[1]
    dh = D // n_heads
    scale = 1.0 / math.sqrt(dh)

    prep = {
        'word_emb': params['word_emb'],
        'pos_emb': params['pos_emb'],
        'emb_ln_g': params['emb_ln_g'],
        'emb_ln_b': params['emb_ln_b'],
        'layers': [],
    }
    for p in params['layers']:
        wqkv = jnp.concatenate([p['wq'] * scale, p['wk'], p['wv']], axis=-1)  # (D, 3D)
        bqkv = jnp.concatenate([p['bq'] * scale, p['bk'], p['bv']], axis=-1)  # (1, 3D)
        prep['layers'].append({
            'wqkv': wqkv.astype(jnp.bfloat16),
            'bqkv': bqkv,                                      # f32
            'wo': p['wo'].astype(jnp.bfloat16),
            'bo': p['bo'],
            'ln1_g': p['ln1_g'], 'ln1_b': p['ln1_b'],
            'w1': p['w1'].astype(jnp.bfloat16), 'b1': p['b1'],
            'w2': p['w2'].astype(jnp.bfloat16), 'b2': p['b2'],
            'ln2_g': p['ln2_g'], 'ln2_b': p['ln2_b'],
        })
    return prep


# ----------------------------- main --------------------------------------------

if __name__ == "__main__":
    B, S = 2, 8
    D, N_HEADS, FFN, N_LAYERS = 32, 4, 64, 2
    VOCAB, MAX_POS = 100, 64

    key = jax.random.PRNGKey(0)
    k_params, k_ids = jax.random.split(key)
    params = init_params(k_params, VOCAB, MAX_POS, D, N_LAYERS, FFN)
    kparams = prepare_encoder_params(params, N_HEADS)

    input_ids = jax.random.randint(k_ids, (B, S), 0, VOCAB, dtype=jnp.int32)
    attention_mask = jnp.array([[1] * S, [1] * 5 + [0] * 3], dtype=jnp.int32)

    out = text_encoder_forward(input_ids, attention_mask, kparams, n_heads=N_HEADS)
    out = jax.block_until_ready(out)
    assert out.shape == (B, D) and out.dtype == jnp.float32
    assert bool(jnp.all(jnp.isfinite(out)))
    print("KERNEL_OK")
</pallas_src>

<mosaic_0001>
module attributes {stable_mosaic.version = 11 : i64} {
  func.func @_k(%arg0: i32, %arg1: memref<8x128xf32, #tpu.memory_space<vmem>>, %arg2: memref<8x128xf32, #tpu.memory_space<vmem>>) attributes {dimension_semantics = [#tpu.dimension_semantics<arbitrary>], iteration_bounds = array<i64: 2>, scalar_prefetch = 0 : i64, scratch_operands = 0 : i64, tpu.core_type = #tpu.core_type<tc>, window_params = [{pipeline_mode = #tpu.pipeline_mode<synchronous>, transform_indices = @transform_0, window_bounds = array<i64: 8, 128>}, {pipeline_mode = #tpu.pipeline_mode<synchronous>, transform_indices = @transform_1, window_bounds = array<i64: 8, 128>}]} {
    %c0 = arith.constant 0 : index
    %c0_0 = arith.constant 0 : index
    %0 = vector.load %arg1[%c0, %c0_0] : memref<8x128xf32, #tpu.memory_space<vmem>>, vector<8x128xf32>
    %cst = arith.constant 1.000000e+00 : f32
    %1 = vector.broadcast %cst : f32 to vector<8x128xf32>
    %2 = arith.addf %0, %1 : vector<8x128xf32>
    %c0_1 = arith.constant 0 : index
    %c0_2 = arith.constant 0 : index
    %3 = vector.load %arg2[%c0_1, %c0_2] : memref<8x128xf32, #tpu.memory_space<vmem>>, vector<8x128xf32>
    tpu.vector_store %arg2[%c0_1, %c0_2], %2 {strides = array<i32>} : memref<8x128xf32, #tpu.memory_space<vmem>>, vector<8x128xf32>,
    return
  }
  func.func @transform_0(%arg0: i32) -> (i32, i32) {
    %c0_i32 = arith.constant 0 : i32
    %c0_i32_0 = arith.constant 0 : i32
    %c0_i32_1 = arith.constant 0 : i32
    return %c0_i32, %c0_i32_0 : i32, i32
  }
  func.func @transform_1(%arg0: i32) -> (i32, i32) {
    %c0_i32 = arith.constant 0 : i32
    %c0_i32_0 = arith.constant 0 : i32
    %c0_i32_1 = arith.constant 0 : i32
    return %c0_i32, %c0_i32_0 : i32, i32
  }
}

module attributes {stable_mosaic.version = 11 : i64} {
  func.func @emb_ln_kernel(%arg0: i32, %arg1: memref<16x32xf32, #tpu.memory_space<vmem>>, %arg2: memref<1x32xf32, #tpu.memory_space<vmem>>, %arg3: memref<1x32xf32, #tpu.memory_space<vmem>>, %arg4: memref<16x32xbf16, #tpu.memory_space<vmem>>) attributes {dimension_semantics = [#tpu.dimension_semantics<parallel>], iteration_bounds = array<i64: 1>, scalar_prefetch = 0 : i64, scratch_operands = 0 : i64, tpu.core_type = #tpu.core_type<tc>, window_params = [{transform_indices = @transform_0, window_bounds = array<i64: 16, 32>}, {pipeline_mode = #tpu.pipeline_mode<synchronous>, transform_indices = @transform_1, window_bounds = array<i64: 1, 32>}, {pipeline_mode = #tpu.pipeline_mode<synchronous>, transform_indices = @transform_2, window_bounds = array<i64: 1, 32>}, {transform_indices = @transform_3, window_bounds = array<i64: 16, 32>}]} {
    %c0 = arith.constant 0 : index
    %c0_0 = arith.constant 0 : index
    %0 = vector.load %arg1[%c0, %c0_0] : memref<16x32xf32, #tpu.memory_space<vmem>>, vector<16x32xf32>
    %c0_1 = arith.constant 0 : index
    %c0_2 = arith.constant 0 : index
    %1 = vector.load %arg2[%c0_1, %c0_2] : memref<1x32xf32, #tpu.memory_space<vmem>>, vector<1x32xf32>
    %c0_3 = arith.constant 0 : index
    %c0_4 = arith.constant 0 : index
    %2 = vector.load %arg3[%c0_3, %c0_4] : memref<1x32xf32, #tpu.memory_space<vmem>>, vector<1x32xf32>
    %cst = arith.constant dense<0.000000e+00> : vector<16xf32>
    %3 = vector.multi_reduction <add>, %0, %cst [1] : vector<16x32xf32> to vector<16xf32>
    %4 = vector.shape_cast %3 : vector<16xf32> to vector<16x1xf32>
    %cst_5 = arith.constant 3.200000e+01 : f32
    %5 = vector.broadcast %cst_5 : f32 to vector<16x1xf32>
    %6 = arith.divf %4, %5 : vector<16x1xf32>
    %7 = vector.broadcast %6 : vector<16x1xf32> to vector<16x32xf32>
    %8 = arith.subf %0, %7 : vector<16x32xf32>
    %9 = arith.mulf %8, %8 : vector<16x32xf32>
    %cst_6 = arith.constant dense<0.000000e+00> : vector<16xf32>
    %10 = vector.multi_reduction <add>, %9, %cst_6 [1] : vector<16x32xf32> to vector<16xf32>
    %11 = vector.shape_cast %10 : vector<16xf32> to vector<16x1xf32>
    %cst_7 = arith.constant 3.200000e+01 : f32
    %12 = vector.broadcast %cst_7 : f32 to vector<16x1xf32>
    %13 = arith.divf %11, %12 : vector<16x1xf32>
    %14 = vector.broadcast %6 : vector<16x1xf32> to vector<16x32xf32>
    %15 = arith.subf %0, %14 : vector<16x32xf32>
    %cst_8 = arith.constant 9.99999996E-13 : f32
    %16 = vector.broadcast %cst_8 : f32 to vector<16x1xf32>
    %17 = arith.addf %13, %16 : vector<16x1xf32>
    %18 = math.rsqrt %17 : vector<16x1xf32>
    %19 = vector.broadcast %18 : vector<16x1xf32> to vector<16x32xf32>
    %20 = arith.mulf %15, %19 : vector<16x32xf32>
    %21 = vector.broadcast %1 : vector<1x32xf32> to vector<16x32xf32>
    %22 = arith.mulf %20, %21 : vector<16x32xf32>
    %23 = vector.broadcast %2 : vector<1x32xf32> to vector<16x32xf32>
    %24 = arith.addf %22, %23 : vector<16x32xf32>
    %25 = arith.truncf %24 : vector<16x32xf32> to vector<16x32xbf16>
    %c0_9 = arith.constant 0 : index
    %c0_10 = arith.constant 0 : index
    %26 = vector.load %arg4[%c0_9, %c0_10] : memref<16x32xbf16, #tpu.memory_space<vmem>>, vector<16x32xbf16>
    tpu.vector_store %arg4[%c0_9, %c0_10], %25 {strides = array<i32>} : memref<16x32xbf16, #tpu.memory_space<vmem>>, vector<16x32xbf16>,
    return
  }
  func.func @transform_0(%arg0: i32) -> (i32, i32) {
    %c0_i32 = arith.constant 0 : i32
    %c0_i32_0 = arith.constant 0 : i32
    return %arg0, %c0_i32 : i32, i32
  }
  func.func @transform_1(%arg0: i32) -> (i32, i32) {
    %c0_i32 = arith.constant 0 : i32
    %c0_i32_0 = arith.constant 0 : i32
    %c0_i32_1 = arith.constant 0 : i32
    return %c0_i32, %c0_i32_0 : i32, i32
  }
  func.func @transform_2(%arg0: i32) -> (i32, i32) {
    %c0_i32 = arith.constant 0 : i32
    %c0_i32_0 = arith.constant 0 : i32
    %c0_i32_1 = arith.constant 0 : i32
    return %c0_i32, %c0_i32_0 : i32, i32
  }
  func.func @transform_3(%arg0: i32) -> (i32, i32) {
    %c0_i32 = arith.constant 0 : i32
    %c0_i32_0 = arith.constant 0 : i32
    return %arg0, %c0_i32 : i32, i32
  }
}

</mosaic_0001>

<bundles_post_ra>
// kernel: tpu_custom_call.1
= control target key start
LH: loop header
LB: loop body
LE: loop exit
PB: predicated region body
PF: predicated region fallthrough
CT: control target
= control target key end

     0   :  { %6 = vsyncpa [#allocation3], 0  ;;  %s287_s0 = inlined_call_operand.hbm [shape: f32[8,128], index: 0, kind: input, shape index: {}]   ;;  %s288_s1 = inlined_call_operand.hbm [shape: f32[8,128], index: 1, kind: output, shape index: {}]  }
   0x1   :  { %7 = vsyncpa [#allocation4], 0  ;;  %s270_s6 = smov 0  }
   0x2 LB: > { %s149_s7 = sadd.s32 4294967295, %s256_s6   ;;  %p150_p0 = scmp.ge.s32.totalorder %s256_s6, 1  ;;  %s256_s6 = sphi %s270_s6, %s13_s6  }
   0x3   : > { %p60_p1 = scmp.lt.s32.totalorder %s256_s6, 3  ;;  %s72_s10 = sshll.u32 %s287_s0, 4  ;;  %s73_s10 = int_to_ptr.hbm [resolvable:$true] %s72_s10 }
   0x4   : > { %p170_p3 = scmp.eq.s32.totalorder %s149_s7, 0  ;;  %s258_s11 = smov [#allocation2]  }
   0x5   : > { %p61_p2 = pnand %p150_p0, %p60_p1  ;;  %s74_s12 = sshll.u32 %s258_s11, 4  ;;  %s75_s12 = int_to_ptr.vmem [resolvable:$true] %s74_s12 }
   0x7   : > { %p166_p4 = pneg %p61_p2  ;;  %87 = sbr.rel (%p61_p2) target bundleno = 20 (0x14), region = 24 }
   0x9   : > { %p167_p5 = pnand %p170_p3, %p166_p4 }
   0xb   : > { %169 = dma.hbm_to_vmem [thread:$0]  (!%p167_p5), %s73_s10, 128, %s75_s12, [#allocation3]  }
   0xc   : > { %247 = dma.done.wait (%p170_p3), [#allocation3], 128  }
   0xd   : > { %249 = vsyncadd (%p170_p3), [#allocation3], 4294967168  ;;  %s259_s13 = smov [#allocation5]   ;;  %s109_s17 = sshll.u32 %s288_s1, 4  ;;  %v98_v0 = vld [vmem:[#allocation2] sm:$0xff]  ;;  %s110_s17 = int_to_ptr.hbm [resolvable:$true] %s109_s17 }
   0xe   : > { %s107_s14 = sshll.u32 %s259_s13, 4  ;;  %p172_p6 = scmp.eq.s32.totalorder %s149_s7, 1  ;;  %v99_v1 = vadd.f32 1.0, %v98_v0  ;;  %s108_s14 = int_to_ptr.vmem [resolvable:$true] %s107_s14 }
  0x10   : > { %100 = vst [vmem:[#allocation5] sm:$0xff] %v99_v1 }
  0x11   : > { %163 = dma.vmem_to_hbm [thread:$0]  (%p172_p6), %s108_s14, 128, %s110_s17, [#allocation4]  }
  0x12   : > { %251 = dma.done.wait (%p172_p6), [#allocation4], 128  }
  0x13   : > { %253 = vsyncadd (%p172_p6), [#allocation4], 4294967168 }
  0x14 PF: > { %s13_s6 = sadd.s32 1, %s256_s6  }
  0x15   : > { %p10_p7 = scmp.ge.s32.totalorder %s13_s6, 4  }
  0x17   :  { %12 = sbr.rel (!%p10_p7) target bundleno = 2 (0x2), region = 53 }
  0x1c   :  { %123 = vsyncpa [#allocation3], 1 }
  0x1d   :  { %125 = vsyncpa [#allocation3 + $0x1], 1 }
  0x1e   :  { %126 = vsyncpa [#allocation4], 1 }
  0x1f   :  { %128 = vsyncpa [#allocation4 + $0x1], 1 }

// kernel: tpu_custom_call.1
= control target key start
LH: loop header
LB: loop body
LE: loop exit
PB: predicated region body
PF: predicated region fallthrough
CT: control target
= control target key end

     0   :  { %8 = vsyncpa [#allocation3], 0  ;;  %s274_s0 = inlined_call_operand.hbm [shape: f32[16,32], index: 0, kind: input, shape index: {}]   ;;  %s275_s1 = inlined_call_operand.hbm [shape: f32[1,32], index: 1, kind: input, shape index: {}]   ;;  %s276_s2 = inlined_call_operand.vmem [shape: f32[1,32], index: 2, kind: input, shape index: {}]   ;;  %s277_s3 = inlined_call_operand.hbm [shape: bf16[16,32], index: 3, kind: output, shape index: {}]  }
   0x1   :  { %9 = vsyncpa [#allocation6], 0 }
   0x2   :  { %10 = vsyncpa [#allocation4], 0  ;;  %s15_s14 = sshll.u32 %s274_s0, 4  ;;  %s230_s15 = smov [#allocation2]   ;;  %s16_s14 = int_to_ptr.hbm [resolvable:$true] %s15_s14 }
   0x3   :  { %s17_s16 = sshll.u32 %s230_s15, 4  ;;  %s29_s19 = sshll.u32 %s275_s1, 4  ;;  %s18_s16 = int_to_ptr.vmem [resolvable:$true] %s17_s16  ;;  %s30_s19 = int_to_ptr.hbm [resolvable:$true] %s29_s19 }
   0x4   :  { %s231_s20 = smov 128   ;;  %s232_s21 = smov 8  }
   0x5   :  { %23 = dma.hbm_to_vmem [thread:$0]  %s16_s14, 256, %s18_s16, [#allocation3], %s231_s20, %s231_s20, %s232_s21  }
   0x6   :  { %s233_s22 = smov [#allocation5]  }
   0x7   :  { %s31_s23 = sshll.u32 %s233_s22, 4  ;;  %s32_s23 = int_to_ptr.vmem [resolvable:$true] %s31_s23 }
   0x8   :  { %34 = dma.hbm_to_vmem [thread:$0]  %s30_s19, 16, %s32_s23, [#allocation6]  }
   0x9   :  { %224 = dma.done.wait [#allocation3], 256  }
   0xa   :  { %225 = vsyncadd [#allocation3], 4294967040 }
   0xb   :  { %226 = dma.done.wait [#allocation6], 16  }
   0xc   :  { %227 = vsyncadd [#allocation6], 4294967280  ;;  %vm49_vm0 = vcmask 261120   ;;  %v45_v0 = vld [vmem:[#allocation2] sm:$0xff]  ;;  %v46_v2 = vld [vmem:[#allocation2 + $0x8] sm:$0xff]  ;;  %v234_v4 = vmov 32.0  }
   0xd   :  { %v50_v1 = vsel %vm49_vm0, %v45_v0, 0.0  ;;  %v53_v3 = vsel %vm49_vm0, %v46_v2, 0.0  ;;  %146 = vrcp.f32 %v234_v4  ;;  %v144_v35 = vld [vmem:[#allocation5] ss:$0 sm:$0xff]  ;;  %v145_v38 = vld [vmem:[%s276_s2] ss:$0 sm:$0xff] }
   0xe   :  { %51 = vadd.xlane.f32.xlu0 %v50_v1  ;;  %vm113_vm7 = vcmask 257024   ;;  %s235_s24 = smov [#allocation7]   ;;  %s122_s2 = sshll.u32 %s277_s3, 4  ;;  %s123_s2 = int_to_ptr.hbm [resolvable:$true] %s122_s2 }
   0xf   :  { %s120_s25 = sshll.u32 %s235_s24, 4  ;;  %s236_s28 = smov 64   ;;  %s121_s25 = int_to_ptr.vmem [resolvable:$true] %s120_s25 }
  0x10   :  { %s237_s29 = smov 4  }
  0x13   :  { %v147_v5 = vpop.eup %146 }
  0x14   :  { %v57_v6 = vmul.f32 32.0, %v147_v5  ;;  %vm61_vm1 = vweird.f32 %v147_v5 }
  0x16   :  { %54 = vadd.xlane.f32.xlu0 %v53_v3  ;;  %v58_v7 = vsub.f32 1.0, %v57_v6 }
  0x18   :  { %v59_v8 = vmul.f32 %v147_v5, %v58_v7 }
  0x1a   :  { %v60_v9 = vadd.f32 %v147_v5, %v59_v8 }
  0x1c   :  { %v62_v10 = vsel %vm61_vm1, %v147_v5, %v60_v9 }
  0x81   :  { %v52_v11 = vpop.xlane.xlu0 %51 }
  0x82   :  { %v63_v12 = vmul.f32 %v62_v10, %v52_v11 }
  0x84   :  { %v65_v13 = vsub.f32 %v45_v0, %v63_v12 }
  0x86   :  { %v67_v14 = vmul.f32 %v65_v13, %v65_v13 }
  0x88   :  { %v69_v15 = vsel %vm49_vm0, %v67_v14, 0.0 }
  0x89   :  { %70 = vadd.xlane.f32.xlu1 %v69_v15  ;;  %v55_v16 = vpop.xlane.xlu0 %54 }
  0x8a   :  { %v64_v17 = vmul.f32 %v62_v10, %v55_v16 }
  0x8c   :  { %v66_v18 = vsub.f32 %v46_v2, %v64_v17 }
  0x8e   :  { %v68_v19 = vmul.f32 %v66_v18, %v66_v18 }
  0x90   :  { %v72_v20 = vsel %vm49_vm0, %v68_v19, 0.0 }
  0x91   :  { %73 = vadd.xlane.f32.xlu1 %v72_v20 }
  0xfc   :  { %v71_v21 = vpop.xlane.xlu1 %70 }
  0xfd   :  { %v75_v22 = vmul.f32 %v71_v21, %v62_v10 }
  0xff   :  { %v77_v23 = vadd.f32 1e-12, %v75_v22 }
 0x101   :  { %148 = vrsqrt.f32 %v77_v23  ;;  %vm85_vm3 = vweird.f32 %v77_v23 }
 0x104   :  { %v74_v24 = vpop.xlane.xlu1 %73 }
 0x105   :  { %v76_v25 = vmul.f32 %v74_v24, %v62_v10 }
 0x107   :  { %v149_v26 = vpop.eup %148  ;;  %v78_v27 = vadd.f32 1e-12, %v76_v25 }
 0x108   :  { %v80_v28 = vmul.f32 %v149_v26, %v77_v23  ;;  %vm86_vm2 = vweird.f32 %v149_v26 }
 0x109   :  { %150 = vrsqrt.f32 %v78_v27  ;;  %vm87_vm4 = vmor %vm85_vm3, %vm86_vm2  ;;  %vm95_vm6 = vweird.f32 %v78_v27 }
 0x10a   :  { %v81_v29 = vmul.f32 %v149_v26, %v80_v28 }
 0x10c   :  { %v82_v30 = vmul.f32 0.5, %v81_v29 }
 0x10e   :  { %v83_v31 = vsub.f32 1.5, %v82_v30 }
 0x10f   :  { %v151_v32 = vpop.eup %150 }
 0x110   :  { %v84_v33 = vmul.f32 %v149_v26, %v83_v31  ;;  %v90_v34 = vmul.f32 %v151_v32, %v78_v27  ;;  %vm96_vm5 = vweird.f32 %v151_v32 }
 0x111   :  { %vm97_vm8 = vmor %vm95_vm6, %vm96_vm5 }
 0x112   :  { %v88_v36 = vsel %vm87_vm4, %v149_v26, %v84_v33  ;;  %v91_v37 = vmul.f32 %v151_v32, %v90_v34 }
 0x113   :  { %v99_v39 = vmul.f32 %v88_v36, %v65_v13 }
 0x114   :  { %v92_v40 = vmul.f32 0.5, %v91_v37 }
 0x115   :  { %v104_v41 = vmul.f32 %v144_v35, %v99_v39 }
 0x116   :  { %v93_v42 = vsub.f32 1.5, %v92_v40 }
 0x117   :  { %v109_v43 = vadd.f32 %v145_v38, %v104_v41 }
 0x118   :  { %v94_v44 = vmul.f32 %v151_v32, %v93_v42 }
 0x119   :  { %v111_v45 = vpack.c.bf16 %v109_v43, %v109_v43 }
 0x11a   :  { %v98_v46 = vsel %vm97_vm8, %v151_v32, %v94_v44 }
 0x11b   :  { %v100_v47 = vmul.f32 %v98_v46, %v66_v18  ;;  %114 = vst.msk [vmem:[#allocation7] sm:$0xf] %vm113_vm7, %v111_v45 }
 0x11d   :  { %v105_v48 = vmul.f32 %v144_v35, %v100_v47 }
 0x11f   :  { %v110_v49 = vadd.f32 %v145_v38, %v105_v48 }
 0x121   :  { %v112_v50 = vpack.c.bf16 %v110_v49, %v110_v49 }
 0x123   :  { %115 = vst.msk [vmem:[#allocation7 + $0x4] sm:$0xf] %vm113_vm7, %v112_v50 }
 0x124   :  { %128 = dma.vmem_to_hbm [thread:$0]  %s121_s25, 128, %s123_s2, [#allocation4], %s236_s28, %s236_s28, %s237_s29  }
 0x125   :  { %228 = dma.done.wait [#allocation4], 128  }
 0x126   :  { %229 = vsyncadd [#allocation4], 4294967168 }
 0x127   :  { %133 = vsyncpa [#allocation3], 1 }
 0x128   :  { %134 = vsyncpa [#allocation6], 1 }
 0x129   :  { %135 = vsyncpa [#allocation4], 1 }

</bundles_post_ra>
